<compile_context>
chip_gen: v7x
topology: tpu7x:2x2x1
jax: 0.10.0
libtpu: 0.0.40
codegen_flags: <defaults>
</compile_context>

<pallas_src>
import math

import jax
import jax.numpy as jnp
from jax.experimental import pallas as pl
from jax.experimental.pallas import tpu as pltpu

OUT_CLASSES = 3          # real output width of the head
OUT_PAD = 8              # stored output width (3 classes padded to 8 lanes)
_MASK_NEG = -1e30        # finite "minus infinity" folded into the padded bias


def orientation_kernel(x_ref,
                       w1_ref, b1_ref,
                       w2_ref, b2_ref,
                       w3_ref, b3_ref,
                       w4_ref, b4_ref,
                       wo_ref, bo_ref,
                       out_ref):
    # ----- MLPModel: 4 x (Linear -> ReLU), dropout = identity ---------------
    # x arrives f32 from HBM; cast to bf16 once in VMEM for the MXU.
    x = x_ref[...].astype(jnp.bfloat16)                         # [TB, n_vars]

    h = jnp.dot(x, w1_ref[...], preferred_element_type=jnp.float32) + b1_ref[...]
    h = jnp.maximum(h, 0.0).astype(jnp.bfloat16)

    h = jnp.dot(h, w2_ref[...], preferred_element_type=jnp.float32) + b2_ref[...]
    h = jnp.maximum(h, 0.0).astype(jnp.bfloat16)

    h = jnp.dot(h, w3_ref[...], preferred_element_type=jnp.float32) + b3_ref[...]
    h = jnp.maximum(h, 0.0).astype(jnp.bfloat16)

    h = jnp.dot(h, w4_ref[...], preferred_element_type=jnp.float32) + b4_ref[...]
    h = jnp.maximum(h, 0.0).astype(jnp.bfloat16)

    # ----- output Linear(32, 3) padded to 8 lanes + Softmax -----------------
    # wo is zero-padded on lanes 3..7; bo carries -1e30 there, so the padded
    # logits are already masked without any iota/where in the kernel.
    logits = jnp.dot(h, wo_ref[...], preferred_element_type=jnp.float32) + bo_ref[...]

    m = jnp.max(logits, axis=-1, keepdims=True)
    e = jnp.exp(logits - m)                       # padded lanes -> exp(huge neg) = 0
    denom = jnp.sum(e, axis=-1, keepdims=True)
    out_ref[...] = e / denom                      # exact divide: 8-lane, cheap


def _round_up(x, m):
    return ((x + m - 1) // m) * m


def _choose_tile(batch, block_b):
    if batch <= 256:
        # Single block; "equals full array dim" exemption covers any batch.
        return batch
    # Aim for >= ~8 grid steps (v7x megacore sharding + pipeline depth) with a
    # tile that is a multiple of 16 sublanes (bf16 packing of the activations).
    return min(block_b, _round_up(pl.cdiv(batch, 8), 16))


def prepare_params(params):
    """One-time conversion of f32 params to the kernel-ready resident pytree."""
    (w1, b1, w2, b2, w3, b3, w4, b4, wo, bo) = params
    wo_p = jnp.zeros((wo.shape[0], OUT_PAD), jnp.float32).at[:, :OUT_CLASSES].set(wo)
    bo_p = jnp.full((1, OUT_PAD), _MASK_NEG, jnp.float32).at[:, :OUT_CLASSES].set(bo)
    return (w1.astype(jnp.bfloat16), b1.astype(jnp.float32),
            w2.astype(jnp.bfloat16), b2.astype(jnp.float32),
            w3.astype(jnp.bfloat16), b3.astype(jnp.float32),
            w4.astype(jnp.bfloat16), b4.astype(jnp.float32),
            wo_p.astype(jnp.bfloat16), bo_p)


def orientation_forward(x, kernel_params, *, block_b=2048):
    """x: [B, n_variables] float32 -> [B, 3] float32 (softmax probabilities).

    kernel_params must come from prepare_params() (bf16 weights, padded head).
    """
    (w1b, b1, w2b, b2, w3b, b3, w4b, b4, wob, bo_p) = kernel_params
    B, n_vars = x.shape

    tb = _choose_tile(B, block_b)
    grid = (pl.cdiv(B, tb),)        # ragged last block is masked by Pallas

    def resident(shape):
        # Constant index_map -> fetched once, stays resident across grid steps.
        return pl.BlockSpec(shape, lambda i: (0, 0))

    in_specs = [
        pl.BlockSpec((tb, n_vars), lambda i: (i, 0)),            # x: tiled on batch
        resident(w1b.shape), resident(b1.shape),
        resident(w2b.shape), resident(b2.shape),
        resident(w3b.shape), resident(b3.shape),
        resident(w4b.shape), resident(b4.shape),
        resident(wob.shape), resident(bo_p.shape),
    ]
    out_specs = pl.BlockSpec((tb, OUT_PAD), lambda i: (i, 0))

    flops = 2 * B * (n_vars * 128 + 128 * 128 + 128 * 64 + 64 * 32 + 32 * OUT_PAD)
    weight_bytes = sum(int(w.size) * 2 for w in (w1b, w2b, w3b, w4b, wob)) + \
                   sum(int(b.size) * 4 for b in (b1, b2, b3, b4, bo_p))
    bytes_accessed = B * n_vars * 4 + B * OUT_PAD * 4 + weight_bytes

    out = pl.pallas_call(
        orientation_kernel,
        out_shape=jax.ShapeDtypeStruct((B, OUT_PAD), jnp.float32),
        grid=grid,
        in_specs=in_specs,
        out_specs=out_specs,
        compiler_params=pltpu.CompilerParams(
            dimension_semantics=("parallel",),        # megacore shard on v7x
            vmem_limit_bytes=32 * 1024 * 1024,        # safe on v5e/v6e/v7x
        ),
        cost_estimate=pl.CostEstimate(
            flops=flops,
            transcendentals=B * OUT_PAD,
            bytes_accessed=bytes_accessed,
        ),
    )(x, w1b, b1, w2b, b2, w3b, b3, w4b, b4, wob, bo_p)

    return out[:, :OUT_CLASSES]


# ------------------------ deterministic parameter init ----------------------
def _kaiming_uniform(key, fan_in, fan_out):
    # nn.init.kaiming_uniform_(w, nonlinearity='relu'): bound = sqrt(6/fan_in)
    bound = math.sqrt(6.0 / fan_in)
    # stored as [in, out] (transpose of PyTorch's [out, in] weight)
    return jax.random.uniform(key, (fan_in, fan_out), jnp.float32, -bound, bound)


def _xavier_uniform(key, fan_in, fan_out):
    bound = math.sqrt(6.0 / (fan_in + fan_out))
    return jax.random.uniform(key, (fan_in, fan_out), jnp.float32, -bound, bound)


def _linear_bias(key, fan_in, fan_out):
    # PyTorch nn.Linear default bias init: U(-1/sqrt(fan_in), 1/sqrt(fan_in))
    bound = 1.0 / math.sqrt(fan_in)
    # keep biases 2-D (1, out) for clean lane broadcasting in the kernel
    return jax.random.uniform(key, (1, fan_out), jnp.float32, -bound, bound)


def init_params(key, n_variables):
    ks = jax.random.split(key, 10)
    dims = [(n_variables, 128), (128, 128), (128, 64), (64, 32)]
    params = []
    for i, (fi, fo) in enumerate(dims):
        params.append(_kaiming_uniform(ks[2 * i], fi, fo))
        params.append(_linear_bias(ks[2 * i + 1], fi, fo))
    # output head: Linear(32, 3), xavier_uniform weight, default bias
    params.append(_xavier_uniform(ks[8], 32, 3))
    params.append(_linear_bias(ks[9], 32, 3))
    return tuple(params)


def orientation_reference(x, params):
    """Pure-JAX f32 reference of OrientationModel.forward (eval mode)."""
    (w1, b1, w2, b2, w3, b3, w4, b4, wo, bo) = params
    h = jax.nn.relu(x @ w1 + b1)
    h = jax.nn.relu(h @ w2 + b2)
    h = jax.nn.relu(h @ w3 + b3)
    h = jax.nn.relu(h @ w4 + b4)
    return jax.nn.softmax(h @ wo + bo, axis=1)


if __name__ == "__main__":
    key = jax.random.PRNGKey(0)
    k_x, k_p = jax.random.split(key)

    batch = 8
    n_variables = 16  # small synthetic feature count

    x = jax.random.normal(k_x, (batch, n_variables), dtype=jnp.float32)
    params = init_params(k_p, n_variables)
    kernel_params = prepare_params(params)   # one-time, device-resident

    probs = orientation_forward(x, kernel_params)
    probs = jax.block_until_ready(probs)

    assert probs.shape == (batch, OUT_CLASSES)
    assert bool(jnp.all(jnp.isfinite(probs)))
    # exact f32 divide -> rows sum to 1 to f32 precision
    assert jnp.allclose(jnp.sum(probs, axis=1), 1.0, atol=5e-3)
    # loose check against the f32 reference (bf16 weight rounding dominates)
    ref = orientation_reference(x, params)
    assert jnp.allclose(probs, ref, atol=5e-2)
    print("KERNEL_OK")
</pallas_src>

<mosaic_0001>
module attributes {stable_mosaic.version = 11 : i64} {
  func.func @orientation_kernel(%arg0: i32, %arg1: memref<8x16xf32, #tpu.memory_space<vmem>>, %arg2: memref<16x128xbf16, #tpu.memory_space<vmem>>, %arg3: memref<1x128xf32, #tpu.memory_space<vmem>>, %arg4: memref<128x128xbf16, #tpu.memory_space<vmem>>, %arg5: memref<1x128xf32, #tpu.memory_space<vmem>>, %arg6: memref<128x64xbf16, #tpu.memory_space<vmem>>, %arg7: memref<1x64xf32, #tpu.memory_space<vmem>>, %arg8: memref<64x32xbf16, #tpu.memory_space<vmem>>, %arg9: memref<1x32xf32, #tpu.memory_space<vmem>>, %arg10: memref<32x8xbf16, #tpu.memory_space<vmem>>, %arg11: memref<1x8xf32, #tpu.memory_space<vmem>>, %arg12: memref<8x8xf32, #tpu.memory_space<vmem>>) attributes {dimension_semantics = [#tpu.dimension_semantics<parallel>], iteration_bounds = array<i64: 1>, scalar_prefetch = 0 : i64, scratch_operands = 0 : i64, tpu.core_type = #tpu.core_type<tc>, window_params = [{transform_indices = @transform_0, window_bounds = array<i64: 8, 16>}, {pipeline_mode = #tpu.pipeline_mode<synchronous>, transform_indices = @transform_1, window_bounds = array<i64: 16, 128>}, {pipeline_mode = #tpu.pipeline_mode<synchronous>, transform_indices = @transform_2, window_bounds = array<i64: 1, 128>}, {pipeline_mode = #tpu.pipeline_mode<synchronous>, transform_indices = @transform_3, window_bounds = array<i64: 128, 128>}, {pipeline_mode = #tpu.pipeline_mode<synchronous>, transform_indices = @transform_4, window_bounds = array<i64: 1, 128>}, {pipeline_mode = #tpu.pipeline_mode<synchronous>, transform_indices = @transform_5, window_bounds = array<i64: 128, 64>}, {pipeline_mode = #tpu.pipeline_mode<synchronous>, transform_indices = @transform_6, window_bounds = array<i64: 1, 64>}, {pipeline_mode = #tpu.pipeline_mode<synchronous>, transform_indices = @transform_7, window_bounds = array<i64: 64, 32>}, {pipeline_mode = #tpu.pipeline_mode<synchronous>, transform_indices = @transform_8, window_bounds = array<i64: 1, 32>}, {pipeline_mode = #tpu.pipeline_mode<synchronous>, transform_indices = @transform_9, window_bounds = array<i64: 32, 8>}, {pipeline_mode = #tpu.pipeline_mode<synchronous>, transform_indices = @transform_10, window_bounds = array<i64: 1, 8>}, {transform_indices = @transform_11, window_bounds = array<i64: 8, 8>}]} {
    %c0 = arith.constant 0 : index
    %c0_0 = arith.constant 0 : index
    %0 = vector.load %arg1[%c0, %c0_0] : memref<8x16xf32, #tpu.memory_space<vmem>>, vector<8x16xf32>
    %1 = arith.truncf %0 : vector<8x16xf32> to vector<8x16xbf16>
    %c0_1 = arith.constant 0 : index
    %c0_2 = arith.constant 0 : index
    %2 = vector.load %arg2[%c0_1, %c0_2] : memref<16x128xbf16, #tpu.memory_space<vmem>>, vector<16x128xbf16>
    %cst = arith.constant dense<0.000000e+00> : vector<8x128xf32>
    %3 = tpu.matmul %1, %2, %cst {dimension_numbers = #tpu.dot_dimension_numbers<[1], [0], [0], [1], [0, 0, 1, 1], [], []>} : vector<8x16xbf16>, vector<16x128xbf16>, vector<8x128xf32> -> vector<8x128xf32>
    %c0_3 = arith.constant 0 : index
    %c0_4 = arith.constant 0 : index
    %4 = vector.load %arg3[%c0_3, %c0_4] : memref<1x128xf32, #tpu.memory_space<vmem>>, vector<1x128xf32>
    %5 = vector.broadcast %4 : vector<1x128xf32> to vector<8x128xf32>
    %6 = arith.addf %3, %5 : vector<8x128xf32>
    %cst_5 = arith.constant 0.000000e+00 : f32
    %7 = vector.broadcast %cst_5 : f32 to vector<8x128xf32>
    %8 = arith.maximumf %6, %7 : vector<8x128xf32>
    %9 = arith.truncf %8 : vector<8x128xf32> to vector<8x128xbf16>
    %c0_6 = arith.constant 0 : index
    %c0_7 = arith.constant 0 : index
    %10 = vector.load %arg4[%c0_6, %c0_7] : memref<128x128xbf16, #tpu.memory_space<vmem>>, vector<128x128xbf16>
    %cst_8 = arith.constant dense<0.000000e+00> : vector<8x128xf32>
    %11 = tpu.matmul %9, %10, %cst_8 {dimension_numbers = #tpu.dot_dimension_numbers<[1], [0], [0], [1], [0, 0, 1, 1], [], []>} : vector<8x128xbf16>, vector<128x128xbf16>, vector<8x128xf32> -> vector<8x128xf32>
    %c0_9 = arith.constant 0 : index
    %c0_10 = arith.constant 0 : index
    %12 = vector.load %arg5[%c0_9, %c0_10] : memref<1x128xf32, #tpu.memory_space<vmem>>, vector<1x128xf32>
    %13 = vector.broadcast %12 : vector<1x128xf32> to vector<8x128xf32>
    %14 = arith.addf %11, %13 : vector<8x128xf32>
    %cst_11 = arith.constant 0.000000e+00 : f32
    %15 = vector.broadcast %cst_11 : f32 to vector<8x128xf32>
    %16 = arith.maximumf %14, %15 : vector<8x128xf32>
    %17 = arith.truncf %16 : vector<8x128xf32> to vector<8x128xbf16>
    %c0_12 = arith.constant 0 : index
    %c0_13 = arith.constant 0 : index
    %18 = vector.load %arg6[%c0_12, %c0_13] : memref<128x64xbf16, #tpu.memory_space<vmem>>, vector<128x64xbf16>
    %cst_14 = arith.constant dense<0.000000e+00> : vector<8x64xf32>
    %19 = tpu.matmul %17, %18, %cst_14 {dimension_numbers = #tpu.dot_dimension_numbers<[1], [0], [0], [1], [0, 0, 1, 1], [], []>} : vector<8x128xbf16>, vector<128x64xbf16>, vector<8x64xf32> -> vector<8x64xf32>
    %c0_15 = arith.constant 0 : index
    %c0_16 = arith.constant 0 : index
    %20 = vector.load %arg7[%c0_15, %c0_16] : memref<1x64xf32, #tpu.memory_space<vmem>>, vector<1x64xf32>
    %21 = vector.broadcast %20 : vector<1x64xf32> to vector<8x64xf32>
    %22 = arith.addf %19, %21 : vector<8x64xf32>
    %cst_17 = arith.constant 0.000000e+00 : f32
    %23 = vector.broadcast %cst_17 : f32 to vector<8x64xf32>
    %24 = arith.maximumf %22, %23 : vector<8x64xf32>
    %25 = arith.truncf %24 : vector<8x64xf32> to vector<8x64xbf16>
    %c0_18 = arith.constant 0 : index
    %c0_19 = arith.constant 0 : index
    %26 = vector.load %arg8[%c0_18, %c0_19] : memref<64x32xbf16, #tpu.memory_space<vmem>>, vector<64x32xbf16>
    %cst_20 = arith.constant dense<0.000000e+00> : vector<8x32xf32>
    %27 = tpu.matmul %25, %26, %cst_20 {dimension_numbers = #tpu.dot_dimension_numbers<[1], [0], [0], [1], [0, 0, 1, 1], [], []>} : vector<8x64xbf16>, vector<64x32xbf16>, vector<8x32xf32> -> vector<8x32xf32>
    %c0_21 = arith.constant 0 : index
    %c0_22 = arith.constant 0 : index
    %28 = vector.load %arg9[%c0_21, %c0_22] : memref<1x32xf32, #tpu.memory_space<vmem>>, vector<1x32xf32>
    %29 = vector.broadcast %28 : vector<1x32xf32> to vector<8x32xf32>
    %30 = arith.addf %27, %29 : vector<8x32xf32>
    %cst_23 = arith.constant 0.000000e+00 : f32
    %31 = vector.broadcast %cst_23 : f32 to vector<8x32xf32>
    %32 = arith.maximumf %30, %31 : vector<8x32xf32>
    %33 = arith.truncf %32 : vector<8x32xf32> to vector<8x32xbf16>
    %c0_24 = arith.constant 0 : index
    %c0_25 = arith.constant 0 : index
    %34 = vector.load %arg10[%c0_24, %c0_25] : memref<32x8xbf16, #tpu.memory_space<vmem>>, vector<32x8xbf16>
    %cst_26 = arith.constant dense<0.000000e+00> : vector<8x8xf32>
    %35 = tpu.matmul %33, %34, %cst_26 {dimension_numbers = #tpu.dot_dimension_numbers<[1], [0], [0], [1], [0, 0, 1, 1], [], []>} : vector<8x32xbf16>, vector<32x8xbf16>, vector<8x8xf32> -> vector<8x8xf32>
    %c0_27 = arith.constant 0 : index
    %c0_28 = arith.constant 0 : index
    %36 = vector.load %arg11[%c0_27, %c0_28] : memref<1x8xf32, #tpu.memory_space<vmem>>, vector<1x8xf32>
    %37 = vector.broadcast %36 : vector<1x8xf32> to vector<8x8xf32>
    %38 = arith.addf %35, %37 : vector<8x8xf32>
    %cst_29 = arith.constant dense<0xFF800000> : vector<8xf32>
    %39 = vector.multi_reduction <maximumf>, %38, %cst_29 [1] : vector<8x8xf32> to vector<8xf32>
    %40 = vector.shape_cast %39 : vector<8xf32> to vector<8x1xf32>
    %41 = vector.broadcast %40 : vector<8x1xf32> to vector<8x8xf32>
    %42 = arith.subf %38, %41 : vector<8x8xf32>
    %43 = math.exp %42 : vector<8x8xf32>
    %cst_30 = arith.constant dense<0.000000e+00> : vector<8xf32>
    %44 = vector.multi_reduction <add>, %43, %cst_30 [1] : vector<8x8xf32> to vector<8xf32>
    %45 = vector.shape_cast %44 : vector<8xf32> to vector<8x1xf32>
    %46 = vector.broadcast %45 : vector<8x1xf32> to vector<8x8xf32>
    %47 = arith.divf %43, %46 : vector<8x8xf32>
    %c0_31 = arith.constant 0 : index
    %c0_32 = arith.constant 0 : index
    %48 = vector.load %arg12[%c0_31, %c0_32] : memref<8x8xf32, #tpu.memory_space<vmem>>, vector<8x8xf32>
    tpu.vector_store %arg12[%c0_31, %c0_32], %47 {strides = array<i32>} : memref<8x8xf32, #tpu.memory_space<vmem>>, vector<8x8xf32>,
    return
  }
  func.func @transform_0(%arg0: i32) -> (i32, i32) {
    %c0_i32 = arith.constant 0 : i32
    %c0_i32_0 = arith.constant 0 : i32
    return %arg0, %c0_i32 : i32, i32
  }
  func.func @transform_1(%arg0: i32) -> (i32, i32) {
    %c0_i32 = arith.constant 0 : i32
    %c0_i32_0 = arith.constant 0 : i32
    %c0_i32_1 = arith.constant 0 : i32
    return %c0_i32, %c0_i32_0 : i32, i32
  }
  func.func @transform_2(%arg0: i32) -> (i32, i32) {
    %c0_i32 = arith.constant 0 : i32
    %c0_i32_0 = arith.constant 0 : i32
    %c0_i32_1 = arith.constant 0 : i32
    return %c0_i32, %c0_i32_0 : i32, i32
  }
  func.func @transform_3(%arg0: i32) -> (i32, i32) {
    %c0_i32 = arith.constant 0 : i32
    %c0_i32_0 = arith.constant 0 : i32
    %c0_i32_1 = arith.constant 0 : i32
    return %c0_i32, %c0_i32_0 : i32, i32
  }
  func.func @transform_4(%arg0: i32) -> (i32, i32) {
    %c0_i32 = arith.constant 0 : i32
    %c0_i32_0 = arith.constant 0 : i32
    %c0_i32_1 = arith.constant 0 : i32
    return %c0_i32, %c0_i32_0 : i32, i32
  }
  func.func @transform_5(%arg0: i32) -> (i32, i32) {
    %c0_i32 = arith.constant 0 : i32
    %c0_i32_0 = arith.constant 0 : i32
    %c0_i32_1 = arith.constant 0 : i32
    return %c0_i32, %c0_i32_0 : i32, i32
  }
  func.func @transform_6(%arg0: i32) -> (i32, i32) {
    %c0_i32 = arith.constant 0 : i32
    %c0_i32_0 = arith.constant 0 : i32
    %c0_i32_1 = arith.constant 0 : i32
    return %c0_i32, %c0_i32_0 : i32, i32
  }
  func.func @transform_7(%arg0: i32) -> (i32, i32) {
    %c0_i32 = arith.constant 0 : i32
    %c0_i32_0 = arith.constant 0 : i32
    %c0_i32_1 = arith.constant 0 : i32
    return %c0_i32, %c0_i32_0 : i32, i32
  }
  func.func @transform_8(%arg0: i32) -> (i32, i32) {
    %c0_i32 = arith.constant 0 : i32
    %c0_i32_0 = arith.constant 0 : i32
    %c0_i32_1 = arith.constant 0 : i32
    return %c0_i32, %c0_i32_0 : i32, i32
  }
  func.func @transform_9(%arg0: i32) -> (i32, i32) {
    %c0_i32 = arith.constant 0 : i32
    %c0_i32_0 = arith.constant 0 : i32
    %c0_i32_1 = arith.constant 0 : i32
    return %c0_i32, %c0_i32_0 : i32, i32
  }
  func.func @transform_10(%arg0: i32) -> (i32, i32) {
    %c0_i32 = arith.constant 0 : i32
    %c0_i32_0 = arith.constant 0 : i32
    %c0_i32_1 = arith.constant 0 : i32
    return %c0_i32, %c0_i32_0 : i32, i32
  }
  func.func @transform_11(%arg0: i32) -> (i32, i32) {
    %c0_i32 = arith.constant 0 : i32
    %c0_i32_0 = arith.constant 0 : i32
    return %arg0, %c0_i32 : i32, i32
  }
}

</mosaic_0001>

<bundles_post_ra>
// kernel: tpu_custom_call.1
= control target key start
LH: loop header
LB: loop body
LE: loop exit
PB: predicated region body
PF: predicated region fallthrough
CT: control target
= control target key end

     0   :  { %v687_v1 = vmov 0.0   ;;  %vm57_vm0 = vcmask 130048   ;;  %vm688_vm1 = vmmov 0   ;;  %s885_s0 = inlined_call_operand.vmem [shape: f32[8,16], index: 0, kind: input, shape index: {}]   ;;  %s886_s1 = inlined_call_operand.vmem [shape: bf16[16,128], index: 1, kind: input, shape index: {}]   ;;  %s887_s2 = inlined_call_operand.vmem [shape: f32[1,128], index: 2, kind: input, shape index: {}]   ;;  %s888_s3 = inlined_call_operand.vmem [shape: bf16[128,128], index: 3, kind: input, shape index: {}]   ;;  %s889_s4 = inlined_call_operand.vmem [shape: f32[1,128], index: 4, kind: input, shape index: {}]   ;;  %s890_s5 = inlined_call_operand.vmem [shape: bf16[128,64], index: 5, kind: input, shape index: {}]   ;;  %s891_s6 = inlined_call_operand.vmem [shape: f32[1,64], index: 6, kind: input, shape index: {}]   ;;  %s892_s7 = inlined_call_operand.vmem [shape: bf16[64,32], index: 7, kind: input, shape index: {}]   ;;  %s893_s8 = inlined_call_operand.vmem [shape: f32[1,32], index: 8, kind: input, shape index: {}]   ;;  %s894_s9 = inlined_call_operand.vmem [shape: bf16[32,8], index: 9, kind: input, shape index: {}]   ;;  %s895_s10 = inlined_call_operand.vmem [shape: f32[1,8], index: 10, kind: input, shape index: {}]   ;;  %s896_s11 = inlined_call_operand.hbm [shape: f32[8,8], index: 11, kind: output, shape index: {}]  }
   0x1   :  { %v636_v0 = vld [vmem:[%s886_s1] sm:$0xff]   ;;  %567 = vmatprep.subr.bf16.mxu0 %v687_v1  ;;  %573 = vmatprep.subr.bf16.mxu1 %v687_v1  ;;  %v638_v5 = vld [vmem:[%s888_s3 + $0x8] sm:$0xff]   ;;  %v639_v6 = vld [vmem:[%s888_s3 + $0x10] sm:$0xff]  }
   0x2   :  { %v40_v2 = vld [vmem:[%s885_s0] sm:$0xff]  ;;  %568 = vmatpush3.bf16.msra.mxu0 %v636_v0  ;;  %569 = vmatprep.mubr.msk.bf16.mxu0 %vm688_vm1, %v687_v1  ;;  %v640_v7 = vld [vmem:[%s888_s3 + $0x18] sm:$0xff]  }
   0x3   :  { %v637_v3 = vld [vmem:[%s888_s3] sm:$0xff]   ;;  %v41_v4 = vpack.c.bf16 %v40_v2, %v40_v2  ;;  %589 = vmatprep.mubr.msk.bf16.mxu1 %vm688_vm1, %v687_v1  ;;  %593 = vmatprep.subr.bf16.mxu0 %v687_v1 }
   0x4   :  { %574 = vmatpush3.bf16.msra.mxu1 %v637_v3  ;;  %v641_v8 = vld [vmem:[%s888_s3 + $0x20] sm:$0xff]  }
   0x5   :  { %575 = vmatprep.subr.bf16.mxu1 %v687_v1  ;;  %570 = vmatmul.mubr.msk.bf16.vlgmr.msra.gmra.mrb[0].mxu0 %vm57_vm0, %v41_v4 }
   0x6   :  { %609 = vmatprep.mubr.msk.bf16.mxu0 %vm688_vm1, %v687_v1 }
   0x8   :  { %576 = vmatpush3.bf16.msra.mxu1 %v638_v5 }
   0x9   :  { %577 = vmatprep.subr.bf16.mxu1 %v687_v1 }
   0xc   :  { %578 = vmatpush3.bf16.msra.mxu1 %v639_v6 }
   0xd   :  { %579 = vmatprep.subr.bf16.mxu1 %v687_v1 }
  0x10   :  { %580 = vmatpush3.bf16.msra.mxu1 %v640_v7 }
  0x11   :  { %581 = vmatprep.subr.bf16.mxu1 %v687_v1 }
  0x12   :  { %16 = vsyncpa [#allocation3], 0  ;;  %v642_v9 = vld [vmem:[%s888_s3 + $0x28] sm:$0xff]   ;;  %v643_v10 = vld [vmem:[%s888_s3 + $0x30] sm:$0xff]   ;;  %vm368_vm2 = vcmask 523264   ;;  %vm437_vm3 = vcmask 261120  }
  0x13   :  { %v644_v11 = vld [vmem:[%s888_s3 + $0x38] sm:$0xff]   ;;  %v645_v12 = vld [vmem:[%s890_s5] sm:$0xff]   ;;  %v646_v13 = vld [vmem:[%s890_s5 + $0x8] sm:$0xff]   ;;  %vm481_vm4 = vcmask 64512  }
  0x14   :  { %582 = vmatpush3.bf16.msra.mxu1 %v641_v8  ;;  %594 = vmatpush3.bf16.msra.mxu0 %v645_v12  ;;  %v647_v14 = vld [vmem:[%s890_s5 + $0x10] sm:$0xff]   ;;  %v648_v15 = vld [vmem:[%s890_s5 + $0x18] sm:$0xff]   ;;  %v649_v16 = vld [vmem:[%s890_s5 + $0x20] sm:$0xff]  }
  0x15   :  { %583 = vmatprep.subr.bf16.mxu1 %v687_v1  ;;  %595 = vmatprep.subr.bf16.mxu0 %v687_v1  ;;  %v650_v17 = vld [vmem:[%s890_s5 + $0x28] sm:$0xff]   ;;  %v508_v18 = vld [vmem:[%s887_s2] ss:$0 sm:$0xff]  ;;  %v651_v26 = vld [vmem:[%s890_s5 + $0x30] sm:$0xff]  }
  0x16   :  { %v652_v27 = vld [vmem:[%s890_s5 + $0x38] sm:$0xff]   ;;  %v653_v28 = vld [vmem:[%s892_s7] sm:$0xff]   ;;  %v654_v29 = vld [vmem:[%s892_s7 + $0x8] sm:$0xff]  }
  0x17   :  { %v511_v30 = vld [vmem:[%s889_s4] ss:$0 sm:$0xff]  ;;  %v655_v38 = vld [vmem:[%s892_s7 + $0x10] sm:$0xff]   ;;  %v656_v39 = vld [vmem:[%s892_s7 + $0x18] sm:$0xff]  }
  0x18   :  { %584 = vmatpush3.bf16.msra.mxu1 %v642_v9  ;;  %596 = vmatpush3.bf16.msra.mxu0 %v646_v13  ;;  %v657_v40 = vld [vmem:[%s894_s9] sm:$0xff]   ;;  %v658_v49 = vld [vmem:[%s894_s9 + $0x8] sm:$0xff]  }
  0x19   :  { %585 = vmatprep.subr.bf16.mxu1 %v687_v1  ;;  %597 = vmatprep.subr.bf16.mxu0 %v687_v1  ;;  %v520_v41 = vld [vmem:[%s891_s6] ss:$0 sm:$0xff] }
  0x1a   :  { %v529_v50 = vld [vmem:[%s893_s8] ss:$0 sm:$0xff]  ;;  %s689_s8 = smov [#allocation2]  }
  0x1b   :  { %v535_v58 = vld [vmem:[%s895_s10] ss:$0 sm:$0xff]  ;;  %s500_s9 = sshll.u32 %s689_s8, 4  ;;  %s501_s9 = int_to_ptr.vmem [resolvable:$true] %s500_s9 }
  0x1c   :  { %586 = vmatpush3.bf16.msra.mxu1 %v643_v10  ;;  %598 = vmatpush3.bf16.msra.mxu0 %v647_v14  ;;  %s663_s10 = scalar_lea.vmem %s501_s9, 128  ;;  %p668_p1 = scmp.lt.s32.totalorder %s501_s9, %s501_s9 }
  0x1d   :  { %587 = vmatprep.subr.bf16.mxu1 %v687_v1  ;;  %599 = vmatprep.subr.bf16.mxu0 %v687_v1  ;;  %p664_p0 = scmp.ne.s32.totalorder %s501_s9, %s663_s10  ;;  %p669_p2 = scmp.lt.s32.totalorder %s663_s10, %s663_s10 }
  0x1f   :  { %p670_p3 = por %p669_p2, %p668_p1 }
  0x20   :  { %588 = vmatpush3.bf16.msra.mxu1 %v644_v11  ;;  %600 = vmatpush3.bf16.msra.mxu0 %v648_v15 }
  0x21   :  { %613 = vmatprep.subr.bf16.mxu1 %v687_v1  ;;  %601 = vmatprep.subr.bf16.mxu0 %v687_v1  ;;  %p671_p4 = pnand %p670_p3, %p664_p0 }
  0x24   :  { %602 = vmatpush3.bf16.msra.mxu0 %v649_v16 }
  0x25   :  { %603 = vmatprep.subr.bf16.mxu0 %v687_v1 }
  0x28   :  { %604 = vmatpush3.bf16.msra.mxu0 %v650_v17 }
  0x29   :  { %605 = vmatprep.subr.bf16.mxu0 %v687_v1 }
  0x2c   :  { %606 = vmatpush3.bf16.msra.mxu0 %v651_v26 }
  0x2d   :  { %607 = vmatprep.subr.bf16.mxu0 %v687_v1 }
  0x30   :  { %608 = vmatpush3.bf16.msra.mxu0 %v652_v27 }
  0x31   :  { %625 = vmatprep.subr.bf16.mxu0 %v687_v1 }
  0xd8   :  { %v95_v19 = vpop.f32.mrb[0].mxu0 }
  0xd9   :  { %v96_v20 = vadd.f32 %v508_v18, %v95_v19  ;;  %v571_v21 = vpop.f32.mrb[1].mxu0 }
  0xda   :  { %v98_v22 = vpop.f32.mrb[2].mxu0 }
  0xdb   :  { %v101_v23 = vmax.f32 %v96_v20, 0.0  ;;  %v572_v24 = vpop.f32.mrb[3].mxu0 }
  0xdd   :  { %v102_v25 = vpack.c.bf16 %v101_v23, %v101_v23 }
  0xdf   :  { %590 = vmatmul.mubr.bf16.vlgmr.msra.gmra.mrb[0].mxu1 %v102_v25 }
  0xe0   :  { %621 = vmatprep.mubr.msk.bf16.mxu1 %vm688_vm1, %v687_v1  ;;  %614 = vmatpush3.bf16.msra.mxu1 %v653_v28 }
  0xe1   :  { %615 = vmatprep.subr.bf16.mxu1 %v687_v1 }
  0xe4   :  { %616 = vmatpush3.bf16.msra.mxu1 %v654_v29 }
  0xe5   :  { %617 = vmatprep.subr.bf16.mxu1 %v687_v1 }
  0xe8   :  { %618 = vmatpush3.bf16.msra.mxu1 %v655_v38 }
  0xe9   :  { %619 = vmatprep.subr.bf16.mxu1 %v687_v1 }
  0xec   :  { %620 = vmatpush3.bf16.msra.mxu1 %v656_v39 }
 0x1b2   :  { %v208_v31 = vpop.f32.mrb[0].mxu1 }
 0x1b3   :  { %v209_v32 = vadd.f32 %v511_v30, %v208_v31  ;;  %v591_v33 = vpop.f32.mrb[1].mxu1 }
 0x1b4   :  { %v211_v34 = vpop.f32.mrb[2].mxu1 }
 0x1b5   :  { %v214_v35 = vmax.f32 %v209_v32, 0.0  ;;  %v592_v36 = vpop.f32.mrb[3].mxu1 }
 0x1b7   :  { %v215_v37 = vpack.c.bf16 %v214_v35, %v214_v35 }
 0x1b9   :  { %610 = vmatmul.mubr.bf16.vlgmr.msra.gmra.mrb[4].mxu0 %v215_v37 }
 0x1ba   :  { %629 = vmatprep.mubr.msk.bf16.mxu0 %vm688_vm1, %v687_v1  ;;  %626 = vmatpush3.bf16.msra.mxu0 %v657_v40 }
 0x1bb   :  { %627 = vmatprep.subr.bf16.mxu0 %v687_v1 }
 0x1be   :  { %628 = vmatpush3.bf16.msra.mxu0 %v658_v49 }
 0x28c   :  { %v321_v42 = vpop.f32.mrb[4].mxu0 }
 0x28d   :  { %v322_v43 = vadd.f32 %v520_v41, %v321_v42  ;;  %v611_v44 = vpop.f32.mrb[5].mxu0 }
 0x28e   :  { %v324_v45 = vpop.f32.mrb[6].mxu0 }
 0x28f   :  { %v327_v46 = vmax.f32 %v322_v43, 0.0  ;;  %v612_v47 = vpop.f32.mrb[7].mxu0 }
 0x291   :  { %v328_v48 = vpack.c.bf16 %v327_v46, %v327_v46 }
 0x293   :  { %622 = vmatmul.mubr.msk.bf16.vlgmr.msra.gmra.mrb[4].mxu1 %vm368_vm2, %v328_v48 }
 0x366   :  { %v406_v51 = vpop.f32.mrb[4].mxu1 }
 0x367   :  { %v407_v52 = vadd.f32 %v529_v50, %v406_v51  ;;  %v623_v53 = vpop.f32.mrb[5].mxu1 }
 0x368   :  { %v409_v54 = vpop.f32.mrb[6].mxu1 }
 0x369   :  { %v412_v55 = vmax.f32 %v407_v52, 0.0  ;;  %v624_v56 = vpop.f32.mrb[7].mxu1 }
 0x36b   :  { %v413_v57 = vpack.c.bf16 %v412_v55, %v412_v55 }
 0x36d   :  { %630 = vmatmul.mubr.msk.bf16.vlgmr.msra.gmra.mrb[8].mxu0 %vm437_vm3, %v413_v57 }
 0x440   :  { %v475_v59 = vpop.f32.mrb[8].mxu0 }
 0x441   :  { %v476_v60 = vadd.f32 %v535_v58, %v475_v59  ;;  %v631_v61 = vpop.f32.mrb[9].mxu0 }
 0x442   :  { %v478_v62 = vpop.f32.mrb[10].mxu0 }
 0x443   :  { %v632_v63 = vpop.f32.mrb[11].mxu0  ;;  %v482_v0 = vsel %vm481_vm4, %v476_v60, -inf }
 0x444   :  { %483 = vmax.xlane.f32.xlu0 %v482_v0 }
 0x4d1   :  { %v484_v1 = vpop.xlane.xlu0 %483 }
 0x4d2   :  { %v485_v2 = vsub.f32 %v476_v60, %v484_v1 }
 0x4d4   :  { %v486_v3 = vmul.f32 1.442695, %v485_v2 }
 0x4d6   :  { %659 = vpow2.f32 %v486_v3 }
 0x4e0   :  { %v660_v4 = vpop.eup %659 }
 0x4e1   :  { %v488_v5 = vsel %vm481_vm4, %v660_v4, 0.0 }
 0x4e2   :  { %489 = vadd.xlane.f32.xlu0 %v488_v5 }
 0x56f   :  { %v490_v6 = vpop.xlane.xlu0 %489 }
 0x570   :  { %661 = vrcp.f32 %v490_v6 }
 0x57a   :  { %v662_v7 = vpop.eup %661 }
 0x57b   :  { %v492_v8 = vmul.f32 %v662_v7, %v660_v4 }
 0x57d   :  { %493 = vst.msk [vmem:[#allocation2] sm:$0xff] %vm481_vm4, %v492_v8 }
 0x57e   :  { %674 = shalt.err (!%p671_p4)
}
 0x57f   :  { %s675_s26 = scalar_lea.hbm %s896_s11, 128 }
 0x580   :  { %p676_p5 = scmp.ne.s32.totalorder %s896_s11, %s675_s26  ;;  %p679_p6 = scmp.lt.u32.totalorder %s675_s26, %s896_s11 }
 0x582   :  { %p681_p7 = pnand %p679_p6, %p676_p5 }
 0x584   :  { %684 = shalt.err (!%p681_p7)
}
 0x585   :  { %503 = dma.vmem_to_hbm [thread:$0]  %s501_s9, 128, %s896_s11, [#allocation3]  }
 0x586   :  { %685 = dma.done.wait [#allocation3], 128  }
 0x587   :  { %686 = vsyncadd [#allocation3], 4294967168 }
 0x588   :  { %507 = vsyncpa [#allocation3], 1 }

</bundles_post_ra>
